<compile_context>
chip_gen: v7x
topology: tpu7x:2x2x1
jax: 0.10.0
libtpu: 0.0.40
codegen_flags: <defaults>
</compile_context>

<pallas_src>
import functools

import jax
import jax.numpy as jnp
from jax.experimental import pallas as pl
from jax.experimental.pallas import tpu as pltpu

_LANE = 128          # lane width of a vreg
_LANE_TARGET = 512   # aim for >= this many output lanes of work per grid step


def _round_up(x, m):
    return ((x + m - 1) // m) * m


def _sepconv1d_kernel(x_ref, w_ref, b_ref, o_ref, *, K, Wl):
    """Fused (depthwise * pointwise) separable conv on one lane-merged block.

    x_ref : (C_in, Wl + halo) f32 -- B_blk batch segments merged on lanes + dead halo
    w_ref : (K, C_out, C_in)  f32 -- w[k, o, c] = pointwise[o, c] * depthwise[c, k]
    b_ref : (C_out, 1)        f32 -- pointwise @ depthwise_bias + pointwise_bias
    o_ref : (C_out, Wl)
    """
    x = x_ref[...]                     # single load, already f32 (cast hoisted to wrapper)
    w = w_ref[...]                     # (K, C_out, C_in), tiny
    # K is small & static -> unrolled; each tap is one MXU matmul accumulated in f32.
    acc = jnp.dot(w[0], x[:, 0:Wl], preferred_element_type=jnp.float32)
    for k in range(1, K):
        acc = acc + jnp.dot(w[k], x[:, k:k + Wl],
                            preferred_element_type=jnp.float32)
    o_ref[...] = (acc + b_ref[...]).astype(o_ref.dtype)


def separable_conv1d(x, dw_w, dw_b, pw_w, pw_b):
    """x: (N, C_in, L); dw_w: (C_in, 1, K); dw_b: (C_in,);
       pw_w: (C_out, C_in, 1); pw_b: (C_out,).  Returns (N, C_out, L-K+1)."""
    N, C_in, L = x.shape
    K = dw_w.shape[-1]
    C_out = pw_w.shape[0]
    L_out = L - K + 1

    f32 = jnp.float32
    dww = dw_w.reshape(C_in, K).astype(f32)        # depthwise taps
    pww = pw_w.reshape(C_out, C_in).astype(f32)    # pointwise mixing

    # Fold depthwise into pointwise (both linear):
    #   out[o, l] = sum_{c,k} pww[o,c]*dww[c,k]*x[c, l+k] + (pww @ dw_b + pw_b)[o]
    w_eff = jnp.einsum('oc,ck->koc', pww, dww)                       # (K, C_out, C_in)
    b_eff = pww @ dw_b.reshape(C_in, 1).astype(f32) \
        + pw_b.reshape(C_out, 1).astype(f32)                         # (C_out, 1)

    # Lane-dense layout: one 128-aligned segment per batch element, merged on lanes.
    L_seg = _round_up(max(L, 1), _LANE)
    B_blk = max(1, min(N, _LANE_TARGET // L_seg))   # batch elements per grid step
    num_blocks = pl.cdiv(N, B_blk)
    N_pad = num_blocks * B_blk
    Wl = B_blk * L_seg                              # output lanes per grid step
    halo = _round_up(K - 1, _LANE) if K > 1 else 0  # dead input lanes per block

    x_f = jnp.transpose(x, (1, 0, 2)).astype(f32)                    # (C_in, N, L)
    x_f = jnp.pad(x_f, ((0, 0), (0, N_pad - N), (0, L_seg - L)))     # (C_in, N_pad, L_seg)
    x_f = x_f.reshape(C_in, num_blocks, Wl)
    x_f = jnp.pad(x_f, ((0, 0), (0, 0), (0, halo)))                  # per-block dead halo
    x_m = x_f.reshape(C_in, num_blocks * (Wl + halo))

    kernel = functools.partial(_sepconv1d_kernel, K=K, Wl=Wl)
    cost = pl.CostEstimate(
        flops=2 * N * C_out * C_in * K * L_out,
        transcendentals=0,
        bytes_accessed=4 * (N * C_in * L + K * C_out * C_in + C_out
                            + N * C_out * L_out))

    out_m = pl.pallas_call(
        kernel,
        out_shape=jax.ShapeDtypeStruct((C_out, num_blocks * Wl), x.dtype),
        grid_spec=pltpu.PrefetchScalarGridSpec(
            num_scalar_prefetch=0,
            grid=(num_blocks,),
            in_specs=[
                pl.BlockSpec((C_in, Wl + halo), lambda n: (0, n)),
                pl.BlockSpec((K, C_out, C_in), lambda n: (0, 0, 0)),
                pl.BlockSpec((C_out, 1), lambda n: (0, 0)),
            ],
            out_specs=pl.BlockSpec((C_out, Wl), lambda n: (0, n)),
        ),
        compiler_params=pltpu.CompilerParams(
            dimension_semantics=("parallel",)),     # independent batch blocks (v7x: 2 TCs)
        cost_estimate=cost,
    )(x_m, w_eff, b_eff)

    # Strip per-segment padding and go back to PyTorch's (N, C_out, L_out) layout.
    out = out_m.reshape(C_out, N_pad, L_seg)[:, :N, :L_out]
    return jnp.transpose(out, (1, 0, 2)).astype(x.dtype)


def _reference(x, dw_w, dw_b, pw_w, pw_b):
    """Plain-JAX reference matching PyTorch Conv1d semantics."""
    N, C_in, L = x.shape
    K = dw_w.shape[-1]
    L_out = L - K + 1
    # depthwise
    dw = jnp.zeros((N, C_in, L_out), jnp.float32)
    for k in range(K):
        dw = dw + x[:, :, k:k + L_out] * dw_w[:, 0, k][None, :, None]
    dw = dw + dw_b[None, :, None]
    # pointwise
    out = jnp.einsum('oc,ncl->nol', pw_w[:, :, 0], dw) + pw_b[None, :, None]
    return out


if __name__ == "__main__":
    # Small shapes consistent with the module: batch=2, C_in=4, C_out=8, L=16, K=3
    N, C_in, C_out, L, K = 2, 4, 8, 16, 3

    key = jax.random.PRNGKey(0)
    kx, k1, k2, k3, k4 = jax.random.split(key, 5)

    x = jax.random.normal(kx, (N, C_in, L), dtype=jnp.float32)

    # Deterministic parameter init (uniform, PyTorch-style fan-in scaling).
    bound_dw = 1.0 / (1 * K) ** 0.5
    dw_w = jax.random.uniform(k1, (C_in, 1, K), jnp.float32, -bound_dw, bound_dw)
    dw_b = jax.random.uniform(k2, (C_in,), jnp.float32, -bound_dw, bound_dw)
    bound_pw = 1.0 / (C_in * 1) ** 0.5
    pw_w = jax.random.uniform(k3, (C_out, C_in, 1), jnp.float32, -bound_pw, bound_pw)
    pw_b = jax.random.uniform(k4, (C_out,), jnp.float32, -bound_pw, bound_pw)

    out = separable_conv1d(x, dw_w, dw_b, pw_w, pw_b)
    out = jax.block_until_ready(out)

    ref = _reference(x, dw_w, dw_b, pw_w, pw_b)
    assert out.shape == (N, C_out, L - K + 1), out.shape
    assert jnp.allclose(out, ref, atol=1e-5, rtol=1e-5), \
        float(jnp.max(jnp.abs(out - ref)))

    print("KERNEL_OK")
</pallas_src>

<mosaic_0001>
module attributes {stable_mosaic.version = 11 : i64} {
  func.func @_sepconv1d_kernel(%arg0: i32, %arg1: memref<4x384xf32, #tpu.memory_space<vmem>>, %arg2: memref<3x8x4xf32, #tpu.memory_space<vmem>>, %arg3: memref<8x1xf32, #tpu.memory_space<vmem>>, %arg4: memref<8x256xf32, #tpu.memory_space<vmem>>) attributes {dimension_semantics = [#tpu.dimension_semantics<parallel>], iteration_bounds = array<i64: 1>, scalar_prefetch = 0 : i64, scratch_operands = 0 : i64, tpu.core_type = #tpu.core_type<tc>, window_params = [{transform_indices = @transform_0, window_bounds = array<i64: 4, 384>}, {pipeline_mode = #tpu.pipeline_mode<synchronous>, transform_indices = @transform_1, window_bounds = array<i64: 3, 8, 4>}, {pipeline_mode = #tpu.pipeline_mode<synchronous>, transform_indices = @transform_2, window_bounds = array<i64: 8, 1>}, {transform_indices = @transform_3, window_bounds = array<i64: 8, 256>}]} {
    %c0 = arith.constant 0 : index
    %c0_0 = arith.constant 0 : index
    %0 = vector.load %arg1[%c0, %c0_0] : memref<4x384xf32, #tpu.memory_space<vmem>>, vector<4x384xf32>
    %c0_1 = arith.constant 0 : index
    %c0_2 = arith.constant 0 : index
    %c0_3 = arith.constant 0 : index
    %1 = vector.load %arg2[%c0_1, %c0_2, %c0_3] : memref<3x8x4xf32, #tpu.memory_space<vmem>>, vector<3x8x4xf32>
    %2 = vector.extract_strided_slice %1 {offsets = [0, 0, 0], sizes = [1, 8, 4], strides = [1, 1, 1]} : vector<3x8x4xf32> to vector<1x8x4xf32>
    %3 = vector.shape_cast %2 : vector<1x8x4xf32> to vector<8x4xf32>
    %4 = vector.extract_strided_slice %0 {offsets = [0, 0], sizes = [4, 256], strides = [1, 1]} : vector<4x384xf32> to vector<4x256xf32>
    %cst = arith.constant dense<0.000000e+00> : vector<8x256xf32>
    %5 = tpu.matmul %3, %4, %cst {dimension_numbers = #tpu.dot_dimension_numbers<[1], [0], [0], [1], [0, 0, 1, 1], [], []>} : vector<8x4xf32>, vector<4x256xf32>, vector<8x256xf32> -> vector<8x256xf32>
    %6 = vector.extract_strided_slice %1 {offsets = [1, 0, 0], sizes = [1, 8, 4], strides = [1, 1, 1]} : vector<3x8x4xf32> to vector<1x8x4xf32>
    %7 = vector.shape_cast %6 : vector<1x8x4xf32> to vector<8x4xf32>
    %8 = vector.extract_strided_slice %0 {offsets = [0, 1], sizes = [4, 256], strides = [1, 1]} : vector<4x384xf32> to vector<4x256xf32>
    %cst_4 = arith.constant dense<0.000000e+00> : vector<8x256xf32>
    %9 = tpu.matmul %7, %8, %cst_4 {dimension_numbers = #tpu.dot_dimension_numbers<[1], [0], [0], [1], [0, 0, 1, 1], [], []>} : vector<8x4xf32>, vector<4x256xf32>, vector<8x256xf32> -> vector<8x256xf32>
    %10 = arith.addf %5, %9 : vector<8x256xf32>
    %11 = vector.extract_strided_slice %1 {offsets = [2, 0, 0], sizes = [1, 8, 4], strides = [1, 1, 1]} : vector<3x8x4xf32> to vector<1x8x4xf32>
    %12 = vector.shape_cast %11 : vector<1x8x4xf32> to vector<8x4xf32>
    %13 = vector.extract_strided_slice %0 {offsets = [0, 2], sizes = [4, 256], strides = [1, 1]} : vector<4x384xf32> to vector<4x256xf32>
    %cst_5 = arith.constant dense<0.000000e+00> : vector<8x256xf32>
    %14 = tpu.matmul %12, %13, %cst_5 {dimension_numbers = #tpu.dot_dimension_numbers<[1], [0], [0], [1], [0, 0, 1, 1], [], []>} : vector<8x4xf32>, vector<4x256xf32>, vector<8x256xf32> -> vector<8x256xf32>
    %15 = arith.addf %10, %14 : vector<8x256xf32>
    %c0_6 = arith.constant 0 : index
    %c0_7 = arith.constant 0 : index
    %16 = vector.load %arg3[%c0_6, %c0_7] : memref<8x1xf32, #tpu.memory_space<vmem>>, vector<8x1xf32>
    %17 = vector.broadcast %16 : vector<8x1xf32> to vector<8x256xf32>
    %18 = arith.addf %15, %17 : vector<8x256xf32>
    %c0_8 = arith.constant 0 : index
    %c0_9 = arith.constant 0 : index
    %19 = vector.load %arg4[%c0_8, %c0_9] : memref<8x256xf32, #tpu.memory_space<vmem>>, vector<8x256xf32>
    tpu.vector_store %arg4[%c0_8, %c0_9], %18 {strides = array<i32>} : memref<8x256xf32, #tpu.memory_space<vmem>>, vector<8x256xf32>,
    return
  }
  func.func @transform_0(%arg0: i32) -> (i32, i32) {
    %c0_i32 = arith.constant 0 : i32
    %c0_i32_0 = arith.constant 0 : i32
    return %c0_i32, %arg0 : i32, i32
  }
  func.func @transform_1(%arg0: i32) -> (i32, i32, i32) {
    %c0_i32 = arith.constant 0 : i32
    %c0_i32_0 = arith.constant 0 : i32
    %c0_i32_1 = arith.constant 0 : i32
    %c0_i32_2 = arith.constant 0 : i32
    return %c0_i32, %c0_i32_0, %c0_i32_1 : i32, i32, i32
  }
  func.func @transform_2(%arg0: i32) -> (i32, i32) {
    %c0_i32 = arith.constant 0 : i32
    %c0_i32_0 = arith.constant 0 : i32
    %c0_i32_1 = arith.constant 0 : i32
    return %c0_i32, %c0_i32_0 : i32, i32
  }
  func.func @transform_3(%arg0: i32) -> (i32, i32) {
    %c0_i32 = arith.constant 0 : i32
    %c0_i32_0 = arith.constant 0 : i32
    return %c0_i32, %arg0 : i32, i32
  }
}

</mosaic_0001>

<bundles_post_ra>
// kernel: tpu_custom_call.1
= control target key start
LH: loop header
LB: loop body
LE: loop exit
PB: predicated region body
PF: predicated region fallthrough
CT: control target
= control target key end

     0   :  { %vm36_vm0 = vcmask 1043456   ;;  %v347_v2 = vmov 0.0   ;;  %s411_s0 = inlined_call_operand.vmem [shape: f32[4,384], index: 0, kind: input, shape index: {}]   ;;  %s412_s1 = inlined_call_operand.vmem [shape: f32[3,8,4], index: 1, kind: input, shape index: {}]   ;;  %s413_s2 = inlined_call_operand.vmem [shape: f32[8,1], index: 2, kind: input, shape index: {}]   ;;  %s414_s3 = inlined_call_operand.hbm [shape: f32[8,256], index: 3, kind: output, shape index: {}]  }
   0x1   :  { %v15_v0 = vld [vmem:[%s411_s0] sm:$0xff]  ;;  %183 = vmatprep.mubr.f32.mxu0 %v347_v2  ;;  %105 = vmatprep.mubr.f32.mxu1 %v347_v2 }
   0x2   :  { %v22_v1 = vcombine.high %v15_v0, %v15_v0 }
   0x3   :  { %8 = vsyncpa [#allocation3], 0  ;;  %s348_s14 = smov 126   ;;  %s349_s15 = smov 127   ;;  %v17_v3 = vld [vmem:[%s412_s1] sm:$0xff]  ;;  %vm32_vm1 = vcmask 31744  }
   0x4   :  { %192 = vrot.lane.b32.xlu1 %v22_v1, %s348_s14  ;;  %25 = vrot.lane.b32.xlu0 %v22_v1, %s349_s15  ;;  %v16_v4 = vld [vmem:[%s411_s0 + $0x8] sm:$0xf]  ;;  %v350_v5 = vmov 0   ;;  %v279_v6 = vld [vmem:[%s413_s2] sm:$0xff]  ;;  %vm196_vm2 = vcmask 1031168   ;;  %vm29_vm3 = vcmask 1039360  }
   0x5   :  { %306 = vmatprep.subr.msk.mxu0 %vm36_vm0, %v22_v1  ;;  %321 = vset.pattern.permute.xlu0 %v350_v5  ;;  %v18_v15 = vld [vmem:[%s412_s1 + $0x8] sm:$0xff]  ;;  %v19_v16 = vld [vmem:[%s412_s1 + $0x10] sm:$0xff]  ;;  %s351_s24 = smov [#allocation2]  }
   0x6   :  { %307 = vmatpush1.msk.msra.mxu0 %vm36_vm0, %v15_v0  ;;  %s295_s25 = sshll.u32 %s351_s24, 4  ;;  %s296_s25 = int_to_ptr.vmem [resolvable:$true] %s295_s25 }
   0x7   :  { %308 = vmatmul.mubr.msk.f32.vlgmr.msra.gmra.mrb[0].mxu0 %vm32_vm1, %v17_v3  ;;  %s323_s1 = scalar_lea.vmem %s296_s25, 256  ;;  %p328_p1 = scmp.lt.s32.totalorder %s296_s25, %s296_s25 }
   0x8   :  { %194 = vrot.lane.b32.xlu1 %v16_v4, %s348_s14  ;;  %27 = vrot.lane.b32.xlu0 %v16_v4, %s349_s15  ;;  %p324_p0 = scmp.ne.s32.totalorder %s296_s25, %s323_s1  ;;  %p329_p2 = scmp.lt.s32.totalorder %s323_s1, %s323_s1 }
   0x9   :  { %270 = vmatprep.mubr.f32.mxu0 %v347_v2 }
   0xa   :  { %p330_p3 = por %p329_p2, %p328_p1 }
   0xc   :  { %190 = vrot.lane.b32.xlu1 %v15_v0, %s348_s14  ;;  %23 = vrot.lane.b32.xlu0 %v15_v0, %s349_s15  ;;  %p331_p4 = pnand %p330_p3, %p324_p0 }
  0x10   :  { %282 = vperm.xlu0 %321, %v279_v6  }
  0x76   :  { %v193_v7 = vpop.permute.xlu1 %192  ;;  %v26_v8 = vpop.permute.xlu0 %25 }
  0x7a   :  { %v195_v9 = vpop.permute.xlu1 %194  ;;  %v28_v10 = vpop.permute.xlu0 %27 }
  0x7b   :  { %v198_v11 = vsel %vm196_vm2, %v193_v7, %v195_v9  ;;  %v31_v12 = vsel %vm29_vm3, %v26_v8, %v28_v10 }
  0x7c   :  { %309 = vmatprep.subr.msk.mxu0 %vm36_vm0, %v198_v11  ;;  %303 = vmatprep.subr.msk.mxu1 %vm36_vm0, %v31_v12 }
  0x7e   :  { %v191_v13 = vpop.permute.xlu1 %190  ;;  %v24_v14 = vpop.permute.xlu0 %23 }
  0x7f   :  { %v197_v17 = vsel %vm196_vm2, %v191_v13, %v193_v7  ;;  %v30_v18 = vsel %vm29_vm3, %v24_v14, %v26_v8 }
  0x80   :  { %304 = vmatpush1.msk.msra.mxu1 %vm36_vm0, %v30_v18  ;;  %310 = vmatpush1.msk.msra.mxu0 %vm36_vm0, %v197_v17 }
  0x81   :  { %305 = vmatmul.mubr.msk.f32.vlgmr.msra.gmra.mrb[0].mxu1 %vm32_vm1, %v18_v15  ;;  %311 = vmatmul.mubr.msk.f32.vlgmr.msra.gmra.mrb[0].mxu0 %vm32_vm1, %v19_v16 }
  0x8f   :  { %v283_v19 = vpop.permute.xlu0 %282 }
 0x154   :  { %v107_v20 = vpop.f32.mrb[0].mxu1  ;;  %v272_v21 = vpop.f32.mrb[0].mxu0 }
 0x155   :  { %v312_v22 = vadd.f32 %v272_v21, %v107_v20  ;;  %v109_v23 = vpop.f32.mrb[1].mxu1  ;;  %v274_v24 = vpop.f32.mrb[1].mxu0 }
 0x156   :  { %v313_v25 = vadd.f32 %v274_v24, %v109_v23 }
 0x157   :  { %v285_v26 = vadd.f32 %v312_v22, %v283_v19 }
 0x158   :  { %v286_v27 = vadd.f32 %v313_v25, %v283_v19 }
 0x159   :  { %287 = vst [vmem:[#allocation2] sm:$0xff] %v285_v26 }
 0x15a   :  { %288 = vst [vmem:[#allocation2 + $0x8] sm:$0xff] %v286_v27 }
 0x15b   :  { %334 = shalt.err (!%p331_p4)
}
 0x15c   :  { %s335_s28 = scalar_lea.hbm %s414_s3, 256 }
 0x15d   :  { %p336_p5 = scmp.ne.s32.totalorder %s414_s3, %s335_s28  ;;  %p339_p6 = scmp.lt.u32.totalorder %s335_s28, %s414_s3 }
 0x15f   :  { %p341_p7 = pnand %p339_p6, %p336_p5 }
 0x161   :  { %344 = shalt.err (!%p341_p7)
}
 0x162   :  { %298 = dma.vmem_to_hbm [thread:$0]  %s296_s25, 256, %s414_s3, [#allocation3]  }
 0x163   :  { %345 = dma.done.wait [#allocation3], 256  }
 0x164   :  { %346 = vsyncadd [#allocation3], 4294967040 }
 0x165   :  { %302 = vsyncpa [#allocation3], 1 }

</bundles_post_ra>
